<compile_context>
chip_gen: v7x
topology: tpu7x:2x2x1
jax: 0.10.0
libtpu: 0.0.40
codegen_flags: <defaults>
</compile_context>

<pallas_src>
import functools

import jax
import jax.numpy as jnp
from jax.experimental import pallas as pl
from jax.experimental.pallas import tpu as pltpu

IN_DIM = 28 * 28   # 784
HID = 64
OUT_DIM = 10


def _round_up(x, m):
    return (x + m - 1) // m * m


def _mlp_kernel(x_ref,
                w1_ref, b1_ref,
                w2_ref, b2_ref,
                w3_ref, b3_ref,
                w4_ref, b4_ref,
                o_ref):
    cdt = w1_ref.dtype  # bf16 compute dtype for MXU inputs

    # Per-tile cast of the streamed batch tile to the MXU input dtype.
    # (No-op if x already arrives in bf16; otherwise a cheap VPU pass that is
    # hidden under the dominant x DMA.)
    x = x_ref[...].astype(cdt)

    # Layer 1: Linear(784 -> 64) + ReLU (bf16 MXU inputs, f32 accumulate).
    h = jnp.dot(x, w1_ref[...], preferred_element_type=jnp.float32)
    h = jnp.maximum(h + b1_ref[...], 0.0).astype(cdt)
    # Layer 2: Linear(64 -> 64) + ReLU
    h = jnp.dot(h, w2_ref[...], preferred_element_type=jnp.float32)
    h = jnp.maximum(h + b2_ref[...], 0.0).astype(cdt)
    # Layer 3: Linear(64 -> 64) + ReLU
    h = jnp.dot(h, w3_ref[...], preferred_element_type=jnp.float32)
    h = jnp.maximum(h + b3_ref[...], 0.0).astype(cdt)
    # Layer 4: Linear(64 -> 10), f32 logits.
    logits = jnp.dot(h, w4_ref[...], preferred_element_type=jnp.float32)
    logits = logits + b4_ref[...]

    # Numerically stable log_softmax over the 10 real classes. Compute is
    # f32 on the VPU/EUP (fine on every generation incl. v5e's no-bf16 VPU).
    m = jnp.max(logits, axis=-1, keepdims=True)
    shifted = logits - m
    lse = jnp.log(jnp.sum(jnp.exp(shifted), axis=-1, keepdims=True))
    o_ref[...] = (shifted - lse).astype(o_ref.dtype)


@functools.partial(jax.jit, static_argnames=("batch_tile", "compute_dtype"))
def net_forward(x, params, *, batch_tile=1024, compute_dtype=jnp.bfloat16):
    """x: (B, 784) float (f32 or bf16; streamed as-is, cast per tile in-kernel).
    params: dict of w1..w4 stored (in, out) f32 and b1..b4 (1, out) f32.

    Returns (B, 10) float32 log-probs.
    """
    B = x.shape[0]

    # Tile selection: cap at batch_tile, but also shrink toward ceil(B/2) so
    # the grid has >= 2 steps whenever possible (lets "parallel" shard the
    # batch across both v7x TensorCores). Keep a multiple of 8 sublanes.
    half = _round_up(-(-B // 2), 8)
    bt = max(8, min(int(batch_tile), half))
    bt = _round_up(bt, 8)

    grid = (pl.cdiv(B, bt),)  # ragged tail handled by Pallas boundary masking

    # Weights in bf16 for the MXU (tiny, ~120 KB total -> negligible traffic);
    # biases stay f32 and are added in f32 inside the kernel.
    w1 = params["w1"].astype(compute_dtype)
    w2 = params["w2"].astype(compute_dtype)
    w3 = params["w3"].astype(compute_dtype)
    w4 = params["w4"].astype(compute_dtype)
    b1, b2, b3, b4 = params["b1"], params["b2"], params["b3"], params["b4"]

    full = lambda a: pl.BlockSpec(a.shape, lambda i: (0, 0))  # grid-invariant block

    out = pl.pallas_call(
        _mlp_kernel,
        out_shape=jax.ShapeDtypeStruct((B, OUT_DIM), jnp.float32),
        grid_spec=pltpu.PrefetchScalarGridSpec(
            num_scalar_prefetch=0,
            grid=grid,
            in_specs=[
                pl.BlockSpec((bt, IN_DIM), lambda i: (i, 0)),  # streamed x tile
                full(w1), full(b1),
                full(w2), full(b2),
                full(w3), full(b3),
                full(w4), full(b4),
            ],
            out_specs=pl.BlockSpec((bt, OUT_DIM), lambda i: (i, 0)),
        ),
        compiler_params=pltpu.CompilerParams(
            dimension_semantics=("parallel",)),  # shard batch tiles across TCs (v7x)
    )(x, w1, b1, w2, b2, w3, b3, w4, b4)

    return out


def init_params(key):
    """Deterministic init mimicking PyTorch's default Linear init
    (uniform(-1/sqrt(fan_in), 1/sqrt(fan_in)))."""
    dims = [(IN_DIM, HID), (HID, HID), (HID, HID), (HID, OUT_DIM)]
    params = {}
    keys = jax.random.split(key, 2 * len(dims))
    for n, (fan_in, fan_out) in enumerate(dims, start=1):
        bound = 1.0 / jnp.sqrt(float(fan_in))
        wk, bk = keys[2 * (n - 1)], keys[2 * (n - 1) + 1]
        params[f"w{n}"] = jax.random.uniform(
            wk, (fan_in, fan_out), jnp.float32, -bound, bound)
        params[f"b{n}"] = jax.random.uniform(
            bk, (1, fan_out), jnp.float32, -bound, bound)
    return params


def _reference(x, p, compute_dtype=jnp.bfloat16):
    """Pure-JAX reference with the same bf16-input / f32-accumulate recipe."""
    h = x.astype(compute_dtype)
    for i in (1, 2, 3):
        h = jnp.dot(h, p[f"w{i}"].astype(compute_dtype),
                    preferred_element_type=jnp.float32)
        h = jnp.maximum(h + p[f"b{i}"], 0.0).astype(compute_dtype)
    logits = jnp.dot(h, p["w4"].astype(compute_dtype),
                     preferred_element_type=jnp.float32) + p["b4"]
    return jax.nn.log_softmax(logits, axis=1)


if __name__ == "__main__":
    key = jax.random.PRNGKey(0)
    pkey, xkey = jax.random.split(key)
    params = init_params(pkey)

    # Small demo: B deliberately not a multiple of the tile so the ragged
    # boundary tile + 2-step ("parallel") grid path is exercised.
    B = 20
    x = jax.random.normal(xkey, (B, IN_DIM), jnp.float32)

    out = net_forward(x, params)          # bt -> 16, grid -> (2,)
    out = jax.block_until_ready(out)

    ref = _reference(x, params)
    assert out.shape == (B, OUT_DIM)
    assert bool(jnp.allclose(out, ref, atol=2e-3, rtol=2e-3)), "mismatch vs reference"
    # Rows of exp(log_probs) must sum to 1 (checks the softmax normalizer).
    assert bool(jnp.allclose(jnp.sum(jnp.exp(out), axis=1), 1.0, atol=1e-3))
    print("KERNEL_OK")
</pallas_src>

<mosaic_0001>
module attributes {stable_mosaic.version = 11 : i64} {
  func.func @_mlp_kernel(%arg0: i32, %arg1: memref<16x784xf32, #tpu.memory_space<vmem>>, %arg2: memref<784x64xbf16, #tpu.memory_space<vmem>>, %arg3: memref<1x64xf32, #tpu.memory_space<vmem>>, %arg4: memref<64x64xbf16, #tpu.memory_space<vmem>>, %arg5: memref<1x64xf32, #tpu.memory_space<vmem>>, %arg6: memref<64x64xbf16, #tpu.memory_space<vmem>>, %arg7: memref<1x64xf32, #tpu.memory_space<vmem>>, %arg8: memref<64x10xbf16, #tpu.memory_space<vmem>>, %arg9: memref<1x10xf32, #tpu.memory_space<vmem>>, %arg10: memref<16x10xf32, #tpu.memory_space<vmem>>) attributes {dimension_semantics = [#tpu.dimension_semantics<parallel>], iteration_bounds = array<i64: 2>, scalar_prefetch = 0 : i64, scratch_operands = 0 : i64, tpu.core_type = #tpu.core_type<tc>, window_params = [{transform_indices = @transform_0, window_bounds = array<i64: 16, 784>}, {pipeline_mode = #tpu.pipeline_mode<synchronous>, transform_indices = @transform_1, window_bounds = array<i64: 784, 64>}, {pipeline_mode = #tpu.pipeline_mode<synchronous>, transform_indices = @transform_2, window_bounds = array<i64: 1, 64>}, {pipeline_mode = #tpu.pipeline_mode<synchronous>, transform_indices = @transform_3, window_bounds = array<i64: 64, 64>}, {pipeline_mode = #tpu.pipeline_mode<synchronous>, transform_indices = @transform_4, window_bounds = array<i64: 1, 64>}, {pipeline_mode = #tpu.pipeline_mode<synchronous>, transform_indices = @transform_5, window_bounds = array<i64: 64, 64>}, {pipeline_mode = #tpu.pipeline_mode<synchronous>, transform_indices = @transform_6, window_bounds = array<i64: 1, 64>}, {pipeline_mode = #tpu.pipeline_mode<synchronous>, transform_indices = @transform_7, window_bounds = array<i64: 64, 10>}, {pipeline_mode = #tpu.pipeline_mode<synchronous>, transform_indices = @transform_8, window_bounds = array<i64: 1, 10>}, {transform_indices = @transform_9, window_bounds = array<i64: 16, 10>}]} {
    %c0 = arith.constant 0 : index
    %c0_0 = arith.constant 0 : index
    %0 = vector.load %arg1[%c0, %c0_0] : memref<16x784xf32, #tpu.memory_space<vmem>>, vector<16x784xf32>
    %1 = arith.truncf %0 : vector<16x784xf32> to vector<16x784xbf16>
    %c0_1 = arith.constant 0 : index
    %c0_2 = arith.constant 0 : index
    %2 = vector.load %arg2[%c0_1, %c0_2] : memref<784x64xbf16, #tpu.memory_space<vmem>>, vector<784x64xbf16>
    %cst = arith.constant dense<0.000000e+00> : vector<16x64xf32>
    %3 = tpu.matmul %1, %2, %cst {dimension_numbers = #tpu.dot_dimension_numbers<[1], [0], [0], [1], [0, 0, 1, 1], [], []>} : vector<16x784xbf16>, vector<784x64xbf16>, vector<16x64xf32> -> vector<16x64xf32>
    %c0_3 = arith.constant 0 : index
    %c0_4 = arith.constant 0 : index
    %4 = vector.load %arg3[%c0_3, %c0_4] : memref<1x64xf32, #tpu.memory_space<vmem>>, vector<1x64xf32>
    %5 = vector.broadcast %4 : vector<1x64xf32> to vector<16x64xf32>
    %6 = arith.addf %3, %5 : vector<16x64xf32>
    %cst_5 = arith.constant 0.000000e+00 : f32
    %7 = vector.broadcast %cst_5 : f32 to vector<16x64xf32>
    %8 = arith.maximumf %6, %7 : vector<16x64xf32>
    %9 = arith.truncf %8 : vector<16x64xf32> to vector<16x64xbf16>
    %c0_6 = arith.constant 0 : index
    %c0_7 = arith.constant 0 : index
    %10 = vector.load %arg4[%c0_6, %c0_7] : memref<64x64xbf16, #tpu.memory_space<vmem>>, vector<64x64xbf16>
    %cst_8 = arith.constant dense<0.000000e+00> : vector<16x64xf32>
    %11 = tpu.matmul %9, %10, %cst_8 {dimension_numbers = #tpu.dot_dimension_numbers<[1], [0], [0], [1], [0, 0, 1, 1], [], []>} : vector<16x64xbf16>, vector<64x64xbf16>, vector<16x64xf32> -> vector<16x64xf32>
    %c0_9 = arith.constant 0 : index
    %c0_10 = arith.constant 0 : index
    %12 = vector.load %arg5[%c0_9, %c0_10] : memref<1x64xf32, #tpu.memory_space<vmem>>, vector<1x64xf32>
    %13 = vector.broadcast %12 : vector<1x64xf32> to vector<16x64xf32>
    %14 = arith.addf %11, %13 : vector<16x64xf32>
    %cst_11 = arith.constant 0.000000e+00 : f32
    %15 = vector.broadcast %cst_11 : f32 to vector<16x64xf32>
    %16 = arith.maximumf %14, %15 : vector<16x64xf32>
    %17 = arith.truncf %16 : vector<16x64xf32> to vector<16x64xbf16>
    %c0_12 = arith.constant 0 : index
    %c0_13 = arith.constant 0 : index
    %18 = vector.load %arg6[%c0_12, %c0_13] : memref<64x64xbf16, #tpu.memory_space<vmem>>, vector<64x64xbf16>
    %cst_14 = arith.constant dense<0.000000e+00> : vector<16x64xf32>
    %19 = tpu.matmul %17, %18, %cst_14 {dimension_numbers = #tpu.dot_dimension_numbers<[1], [0], [0], [1], [0, 0, 1, 1], [], []>} : vector<16x64xbf16>, vector<64x64xbf16>, vector<16x64xf32> -> vector<16x64xf32>
    %c0_15 = arith.constant 0 : index
    %c0_16 = arith.constant 0 : index
    %20 = vector.load %arg7[%c0_15, %c0_16] : memref<1x64xf32, #tpu.memory_space<vmem>>, vector<1x64xf32>
    %21 = vector.broadcast %20 : vector<1x64xf32> to vector<16x64xf32>
    %22 = arith.addf %19, %21 : vector<16x64xf32>
    %cst_17 = arith.constant 0.000000e+00 : f32
    %23 = vector.broadcast %cst_17 : f32 to vector<16x64xf32>
    %24 = arith.maximumf %22, %23 : vector<16x64xf32>
    %25 = arith.truncf %24 : vector<16x64xf32> to vector<16x64xbf16>
    %c0_18 = arith.constant 0 : index
    %c0_19 = arith.constant 0 : index
    %26 = vector.load %arg8[%c0_18, %c0_19] : memref<64x10xbf16, #tpu.memory_space<vmem>>, vector<64x10xbf16>
    %cst_20 = arith.constant dense<0.000000e+00> : vector<16x10xf32>
    %27 = tpu.matmul %25, %26, %cst_20 {dimension_numbers = #tpu.dot_dimension_numbers<[1], [0], [0], [1], [0, 0, 1, 1], [], []>} : vector<16x64xbf16>, vector<64x10xbf16>, vector<16x10xf32> -> vector<16x10xf32>
    %c0_21 = arith.constant 0 : index
    %c0_22 = arith.constant 0 : index
    %28 = vector.load %arg9[%c0_21, %c0_22] : memref<1x10xf32, #tpu.memory_space<vmem>>, vector<1x10xf32>
    %29 = vector.broadcast %28 : vector<1x10xf32> to vector<16x10xf32>
    %30 = arith.addf %27, %29 : vector<16x10xf32>
    %cst_23 = arith.constant dense<0xFF800000> : vector<16xf32>
    %31 = vector.multi_reduction <maximumf>, %30, %cst_23 [1] : vector<16x10xf32> to vector<16xf32>
    %32 = vector.shape_cast %31 : vector<16xf32> to vector<16x1xf32>
    %33 = vector.broadcast %32 : vector<16x1xf32> to vector<16x10xf32>
    %34 = arith.subf %30, %33 : vector<16x10xf32>
    %35 = math.exp %34 : vector<16x10xf32>
    %cst_24 = arith.constant dense<0.000000e+00> : vector<16xf32>
    %36 = vector.multi_reduction <add>, %35, %cst_24 [1] : vector<16x10xf32> to vector<16xf32>
    %37 = vector.shape_cast %36 : vector<16xf32> to vector<16x1xf32>
    %38 = math.log %37 : vector<16x1xf32>
    %39 = vector.broadcast %38 : vector<16x1xf32> to vector<16x10xf32>
    %40 = arith.subf %34, %39 : vector<16x10xf32>
    %c0_25 = arith.constant 0 : index
    %c0_26 = arith.constant 0 : index
    %41 = vector.load %arg10[%c0_25, %c0_26] : memref<16x10xf32, #tpu.memory_space<vmem>>, vector<16x10xf32>
    tpu.vector_store %arg10[%c0_25, %c0_26], %40 {strides = array<i32>} : memref<16x10xf32, #tpu.memory_space<vmem>>, vector<16x10xf32>,
    return
  }
  func.func @transform_0(%arg0: i32) -> (i32, i32) {
    %c0_i32 = arith.constant 0 : i32
    %c0_i32_0 = arith.constant 0 : i32
    return %arg0, %c0_i32 : i32, i32
  }
  func.func @transform_1(%arg0: i32) -> (i32, i32) {
    %c0_i32 = arith.constant 0 : i32
    %c0_i32_0 = arith.constant 0 : i32
    %c0_i32_1 = arith.constant 0 : i32
    return %c0_i32, %c0_i32_0 : i32, i32
  }
  func.func @transform_2(%arg0: i32) -> (i32, i32) {
    %c0_i32 = arith.constant 0 : i32
    %c0_i32_0 = arith.constant 0 : i32
    %c0_i32_1 = arith.constant 0 : i32
    return %c0_i32, %c0_i32_0 : i32, i32
  }
  func.func @transform_3(%arg0: i32) -> (i32, i32) {
    %c0_i32 = arith.constant 0 : i32
    %c0_i32_0 = arith.constant 0 : i32
    %c0_i32_1 = arith.constant 0 : i32
    return %c0_i32, %c0_i32_0 : i32, i32
  }
  func.func @transform_4(%arg0: i32) -> (i32, i32) {
    %c0_i32 = arith.constant 0 : i32
    %c0_i32_0 = arith.constant 0 : i32
    %c0_i32_1 = arith.constant 0 : i32
    return %c0_i32, %c0_i32_0 : i32, i32
  }
  func.func @transform_5(%arg0: i32) -> (i32, i32) {
    %c0_i32 = arith.constant 0 : i32
    %c0_i32_0 = arith.constant 0 : i32
    %c0_i32_1 = arith.constant 0 : i32
    return %c0_i32, %c0_i32_0 : i32, i32
  }
  func.func @transform_6(%arg0: i32) -> (i32, i32) {
    %c0_i32 = arith.constant 0 : i32
    %c0_i32_0 = arith.constant 0 : i32
    %c0_i32_1 = arith.constant 0 : i32
    return %c0_i32, %c0_i32_0 : i32, i32
  }
  func.func @transform_7(%arg0: i32) -> (i32, i32) {
    %c0_i32 = arith.constant 0 : i32
    %c0_i32_0 = arith.constant 0 : i32
    %c0_i32_1 = arith.constant 0 : i32
    return %c0_i32, %c0_i32_0 : i32, i32
  }
  func.func @transform_8(%arg0: i32) -> (i32, i32) {
    %c0_i32 = arith.constant 0 : i32
    %c0_i32_0 = arith.constant 0 : i32
    %c0_i32_1 = arith.constant 0 : i32
    return %c0_i32, %c0_i32_0 : i32, i32
  }
  func.func @transform_9(%arg0: i32) -> (i32, i32) {
    %c0_i32 = arith.constant 0 : i32
    %c0_i32_0 = arith.constant 0 : i32
    return %arg0, %c0_i32 : i32, i32
  }
}

</mosaic_0001>

<bundles_post_ra>
// kernel: net_forward.1
= control target key start
LH: loop header
LB: loop body
LE: loop exit
PB: predicated region body
PF: predicated region fallthrough
CT: control target
= control target key end

     0   :  { %s1977_s30 = smov 0   ;;  %s1979_s10 = smov 0   ;;  %s2301_s0 = inlined_call_operand.vmem [shape: f32[20,784], index: 0, kind: input, shape index: {}]   ;;  %s2302_s1 = inlined_call_operand.vmem [shape: bf16[784,64], index: 1, kind: input, shape index: {}]   ;;  %s2303_s2 = inlined_call_operand.vmem [shape: f32[1,64], index: 2, kind: input, shape index: {}]   ;;  %s2304_s3 = inlined_call_operand.vmem [shape: bf16[64,64], index: 3, kind: input, shape index: {}]   ;;  %s2305_s4 = inlined_call_operand.vmem [shape: f32[1,64], index: 4, kind: input, shape index: {}]   ;;  %s2306_s5 = inlined_call_operand.vmem [shape: bf16[64,64], index: 5, kind: input, shape index: {}]   ;;  %s2307_s6 = inlined_call_operand.vmem [shape: f32[1,64], index: 6, kind: input, shape index: {}]   ;;  %s2308_s7 = inlined_call_operand.vmem [shape: bf16[64,10], index: 7, kind: input, shape index: {}]   ;;  %s2309_s8 = inlined_call_operand.vmem [shape: f32[1,10], index: 8, kind: input, shape index: {}]   ;;  %s2310_s9 = inlined_call_operand.vmem [shape: f32[20,10], index: 9, kind: output, shape index: {}]  }
   0x1   :  { %s1981_s11 = smov 0  }
   0x2 LB: > { %s1990_s12 = sadd.s32 4294967295, %s1891_s11   ;;  %s1992_s13 = sadd.s32 1, %s1891_s11   ;;  %s1891_s11 = sphi %s1981_s11, %s2314_s11   ;;  %s1887_s10 = sphi %s1979_s10, %s2313_s10   ;;  %s1883_s30 = sphi %s1977_s30, %s2312_s30  }
   0x3   : > { %s217_s14 = ssub.s32 %s1891_s11, %s1992_s13  ;;  %s220_s15 = sadd.s32 1, %s1887_s10 }
   0x4   : > { %p218_p0 = scmp.eq.s32.totalorder %s217_s14, 0  ;;  %p230_p1 = scmp.ne.s32.totalorder %s1887_s10, %s1883_s30 }
   0x5   : > { %p231_p2 = scmp.eq.s32.totalorder %s1990_s12, 1  ;;  %p1459_p3 = scmp.ge.s32.totalorder %s1891_s11, 1 }
   0x6   : > { %s2000_s16 = scalar_select %p218_p0, %s1887_s10, %s220_s15  }
   0x7   : > { %p2002_p4 = por %p231_p2, %p230_p1  ;;  %p299_p5 = scmp.lt.s32.totalorder %s1891_s11, 3 }
   0x9   : > { %p300_p6 = pnand %p1459_p3, %p299_p5 }
   0xa   : > { %v1768_v0 = vld [vmem:[%s2302_s1 + $0x40] sm:$0xff] (!%p300_p6)   ;;  %v1772_v4 = vld [vmem:[%s2302_s1 + $0x48] sm:$0xff] (!%p300_p6)   ;;  %v1776_v8 = vld [vmem:[%s2302_s1 + $0x50] sm:$0xff] (!%p300_p6)   ;;  %s2049_s14 = sshll.u32 (!%p300_p6), %s1990_s12, 1  ;;  %v1925_v43 = vmov (!%p300_p6), 0.0   ;;  %vm1926_vm0 = vmmov (!%p300_p6), 0  }
   0xb   : > { %303 = sbr.rel (%p300_p6) target bundleno = 1324 (0x52c), region = 56  ;;  %v1769_v1 = vld [vmem:[%s2302_s1] sm:$0xff] (!%p300_p6)   ;;  %1552 = vmatprep.subr.bf16.mxu0 (!%p300_p6), %v1768_v0  ;;  %v1773_v5 = vld [vmem:[%s2302_s1 + $0x8] sm:$0xff] (!%p300_p6)   ;;  %v1777_v9 = vld [vmem:[%s2302_s1 + $0x10] sm:$0xff] (!%p300_p6)   ;;  %p346_p7 = scmp.lt.s32.totalorder (!%p300_p6), %s2049_s14, 2  ;;  %vm783_vm1 = vcmask (!%p300_p6), 130048  }
   0xc   : > { %v1770_v2 = vld [vmem:[%s2302_s1 + $0xc0] sm:$0xff] (!%p300_p6)   ;;  %1553 = vmatpush3.bf16.msra.mxu0 (!%p300_p6), %v1769_v1  ;;  %v1774_v6 = vld [vmem:[%s2302_s1 + $0xc8] sm:$0xff] (!%p300_p6)   ;;  %v1778_v10 = vld [vmem:[%s2302_s1 + $0xd0] sm:$0xff] (!%p300_p6)   ;;  %vm993_vm2 = vcmask (!%p300_p6), 523264   ;;  %vm1210_vm3 = vcmask (!%p300_p6), 80896  }
   0xd   : > { %v1771_v3 = vld [vmem:[%s2302_s1 + $0x80] sm:$0xff] (!%p300_p6)   ;;  %1574 = vmatprep.subr.bf16.mxu1 (!%p300_p6), %v1770_v2  ;;  %1554 = vmatprep.subr.bf16.mxu0 (!%p300_p6), %v1772_v4  ;;  %v1775_v7 = vld [vmem:[%s2302_s1 + $0x88] sm:$0xff] (!%p300_p6)   ;;  %v1779_v11 = vld [vmem:[%s2302_s1 + $0x90] sm:$0xff] (!%p300_p6)  }
   0xe   : > { %1575 = vmatpush3.bf16.msra.mxu1 (!%p300_p6), %v1771_v3  ;;  %v1780_v12 = vld [vmem:[%s2302_s1 + $0x58] sm:$0xff] (!%p300_p6)   ;;  %v1784_v16 = vld [vmem:[%s2302_s1 + $0x60] sm:$0xff] (!%p300_p6)   ;;  %v1788_v20 = vld [vmem:[%s2302_s1 + $0x68] sm:$0xff] (!%p300_p6)  }
   0xf   : > { %1576 = vmatprep.subr.bf16.mxu1 (!%p300_p6), %v1774_v6  ;;  %v1781_v13 = vld [vmem:[%s2302_s1 + $0x18] sm:$0xff] (!%p300_p6)   ;;  %v1785_v17 = vld [vmem:[%s2302_s1 + $0x20] sm:$0xff] (!%p300_p6)   ;;  %v1789_v21 = vld [vmem:[%s2302_s1 + $0x28] sm:$0xff] (!%p300_p6)  }
  0x10   : > { %1555 = vmatpush3.bf16.msra.mxu0 (!%p300_p6), %v1773_v5  ;;  %v1782_v14 = vld [vmem:[%s2302_s1 + $0xd8] sm:$0xff] (!%p300_p6)   ;;  %v1786_v18 = vld [vmem:[%s2302_s1 + $0xe0] sm:$0xff] (!%p300_p6)   ;;  %v1790_v22 = vld [vmem:[%s2302_s1 + $0xe8] sm:$0xff] (!%p300_p6)  }
  0x11   : > { %1556 = vmatprep.subr.bf16.mxu0 (!%p300_p6), %v1776_v8  ;;  %v1783_v15 = vld [vmem:[%s2302_s1 + $0x98] sm:$0xff] (!%p300_p6)   ;;  %v1787_v19 = vld [vmem:[%s2302_s1 + $0xa0] sm:$0xff] (!%p300_p6)   ;;  %v1791_v23 = vld [vmem:[%s2302_s1 + $0xa8] sm:$0xff] (!%p300_p6)  }
  0x12   : > { %1577 = vmatpush3.bf16.msra.mxu1 %v1775_v7  ;;  %s347_s15 = scalar_select %p346_p7, %s2049_s14, 2  ;;  %v1792_v24 = vld [vmem:[%s2302_s1 + $0x70] sm:$0xff]   ;;  %v1796_v28 = vld [vmem:[%s2302_s1 + $0x78] sm:$0xff]   ;;  %v1800_v38 = vld [vmem:[%s2302_s1 + $0x140] sm:$0xff]  }
  0x13   : > { %1578 = vmatprep.subr.bf16.mxu1 %v1778_v10  ;;  %v1793_v25 = vld [vmem:[%s2302_s1 + $0x30] sm:$0xff]   ;;  %v1797_v29 = vld [vmem:[%s2302_s1 + $0x38] sm:$0xff]   ;;  %v1801_v42 = vld [vmem:[%s2302_s1 + $0x100] sm:$0xff]   ;;  %s1549_s18 = sshll.u32 (%p2002_p4), %s1990_s12, 4 }
  0x14   : > { %1557 = vmatpush3.bf16.msra.mxu0 %v1777_v9  ;;  %s1677_s26 = smul.u32 56, %s347_s15  ;;  %v1794_v26 = vld [vmem:[%s2302_s1 + $0xf0] sm:$0xff]   ;;  %v1798_v30 = vld [vmem:[%s2302_s1 + $0xf8] sm:$0xff]   ;;  %v1802_v47 = vld [vmem:[%s2302_s1 + $0x148] sm:$0xff]   ;;  %s2267_s21 = scalar_lea.vmem (%p2002_p4), %s2310_s9, %s1549_s18  }
  0x15   : > { %1558 = vmatprep.subr.bf16.mxu0 %v1780_v12  ;;  %v1795_v27 = vld [vmem:[%s2302_s1 + $0xb0] sm:$0xff]   ;;  %v1799_v34 = vld [vmem:[%s2302_s1 + $0xb8] sm:$0xff]   ;;  %v1803_v48 = vld [vmem:[%s2302_s1 + $0x108] sm:$0xff]  }
  0x16   : > { %1579 = vmatpush3.bf16.msra.mxu1 %v1779_v11  ;;  %s2101_s23 = scalar_lea.vmem %s2301_s0, %s1677_s26  ;;  %v1804_v49 = vld [vmem:[%s2302_s1 + $0x150] sm:$0xff]   ;;  %v1806_v51 = vld [vmem:[%s2302_s1 + $0x158] sm:$0xff]   ;;  %v1808_v53 = vld [vmem:[%s2302_s1 + $0x160] sm:$0xff]  }
  0x17   : > { %1580 = vmatprep.subr.bf16.mxu1 %v1782_v14  ;;  %v364_v31 = vld [vmem:[%s2101_s23 + $0x8] sm:$0xff]  ;;  %v371_v32 = vld [vmem:[%s2101_s23 + $0x40] sm:$0xff]  ;;  %v370_v36 = vld [vmem:[%s2101_s23 + $0x38] sm:$0xff] }
  0x18   : > { %1559 = vmatpush3.bf16.msra.mxu0 %v1781_v13  ;;  %v378_v33 = vpack.c.bf16 %v371_v32, %v364_v31  ;;  %v363_v35 = vld [vmem:[%s2101_s23] sm:$0xff]  ;;  %v366_v39 = vld [vmem:[%s2101_s23 + $0x18] sm:$0xff]  ;;  %v373_v40 = vld [vmem:[%s2101_s23 + $0x50] sm:$0xff] }
  0x19   : > { %1560 = vmatprep.subr.bf16.mxu0 %v1784_v16  ;;  %v377_v37 = vpack.c.bf16 %v370_v36, %v363_v35  ;;  %v380_v41 = vpack.c.bf16 %v373_v40, %v366_v39  ;;  %v365_v44 = vld [vmem:[%s2101_s23 + $0x10] sm:$0xff]  ;;  %v372_v45 = vld [vmem:[%s2101_s23 + $0x48] sm:$0xff]  ;;  %v1807_v52 = vld [vmem:[%s2302_s1 + $0x118] sm:$0xff]  }
  0x1a   : > { %1581 = vmatpush3.bf16.msra.mxu1 %v1783_v15  ;;  %819 = vmatprep.mubr.bf16.mxu0 %v378_v33  ;;  %v379_v46 = vpack.c.bf16 %v372_v45, %v365_v44  ;;  %v1805_v50 = vld [vmem:[%s2302_s1 + $0x110] sm:$0xff]   ;;  %v1809_v54 = vld [vmem:[%s2302_s1 + $0x120] sm:$0xff]   ;;  %v1810_v55 = vld [vmem:[%s2302_s1 + $0x168] sm:$0xff]  }
  0x1b   : > { %1582 = vmatprep.subr.bf16.mxu1 %v1786_v18  ;;  %860 = vmatprep.mubr.bf16.mxu1 %v380_v41  ;;  %v1816_v56 = vld [vmem:[%s2302_s1 + $0x180] sm:$0xff]   ;;  %v368_v57 = vld [vmem:[%s2101_s23 + $0x28] sm:$0xff]  ;;  %v1812_v59 = vld [vmem:[%s2302_s1 + $0x170] sm:$0xff]  }
  0x1c   : > { %1561 = vmatpush3.bf16.msra.mxu0 %v1785_v17  ;;  %v1811_v58 = vld [vmem:[%s2302_s1 + $0x128] sm:$0xff]   ;;  %v375_v60 = vld [vmem:[%s2101_s23 + $0x60] sm:$0xff]  ;;  %v369_v62 = vld [vmem:[%s2101_s23 + $0x30] sm:$0xff] }
  0x1d   : > { %1562 = vmatprep.subr.bf16.mxu0 %v1788_v20  ;;  %v382_v61 = vpack.c.bf16 %v375_v60, %v368_v57  ;;  %v376_v63 = vld [vmem:[%s2101_s23 + $0x68] sm:$0xff]  ;;  %v1813_v1 = vld [vmem:[%s2302_s1 + $0x130] sm:$0xff]   ;;  %v1814_v2 = vld [vmem:[%s2302_s1 + $0x178] sm:$0xff]  }
  0x1e   : > { %1583 = vmatpush3.bf16.msra.mxu1 %v1787_v19  ;;  %v383_v0 = vpack.c.bf16 %v376_v63, %v369_v62  ;;  %v1815_v3 = vld [vmem:[%s2302_s1 + $0x138] sm:$0xff]   ;;  %v367_v4 = vld [vmem:[%s2101_s23 + $0x20] sm:$0xff]  ;;  %v1818_v8 = vld [vmem:[%s2304_s3 + $0x8] sm:$0xff]  }
  0x1f   : > { %1584 = vmatprep.subr.bf16.mxu1 %v1790_v22  ;;  %v374_v5 = vld [vmem:[%s2101_s23 + $0x58] sm:$0xff]  ;;  %v1817_v7 = vld [vmem:[%s2304_s3] sm:$0xff]   ;;  %v1819_v9 = vld [vmem:[%s2304_s3 + $0x10] sm:$0xff]   ;;  %s337_s23 = sand.u32 1, %s1883_s30   ;;  %s1245_s30 = ssub.s32 (%p2002_p4), 3, %s2049_s14 }
  0x20   : > { %1563 = vmatpush3.bf16.msra.mxu0 %v1789_v21  ;;  %v381_v6 = vpack.c.bf16 %v374_v5, %v367_v4  ;;  %v1820_v10 = vld [vmem:[%s2304_s3 + $0x18] sm:$0xff]   ;;  %v1463_v12 = vld [vmem:[%s2303_s2] ss:$0 sm:$0xff]  ;;  %v1827_v62 = vld [vmem:[%s2308_s7 + $0x10] sm:$0xff]   ;;  %s1460_s29 = sshll.u32 %s337_s23, 4  ;;  %p1246_p8 = scmp.lt.s32.totalorder (%p2002_p4), %s1245_s30, 2 }
  0x21   : > { %1564 = vmatprep.subr.bf16.mxu0 %v1792_v24  ;;  %v1821_v45 = vld [vmem:[%s2306_s5] sm:$0xff]   ;;  %v1828_v63 = vld [vmem:[%s2308_s7 + $0x18] sm:$0xff]   ;;  %s2254_s11 = scalar_lea.vmem [#allocation2], %s1460_s29  }
  0x22   : > { %1585 = vmatpush3.bf16.msra.mxu1 %v1791_v23 }
  0x23   : > { %1586 = vmatprep.subr.bf16.mxu1 %v1794_v26 }
  0x24   : > { %1565 = vmatpush3.bf16.msra.mxu0 %v1793_v25 }
  0x25   : > { %1566 = vmatprep.subr.bf16.mxu0 %v1796_v28 }
  0x26   : > { %1587 = vmatpush3.bf16.msra.mxu1 %v1795_v27 }
  0x27   : > { %1588 = vmatprep.subr.bf16.mxu1 %v1798_v30 }
  0x28   : > { %1567 = vmatpush3.bf16.msra.mxu0 %v1797_v29 }
  0x29   : > { %1596 = vmatprep.subr.bf16.mxu0 %v1800_v38 }
  0x2a   : > { %1589 = vmatpush3.bf16.msra.mxu1 %v1799_v34 }
  0x2b   : > { %1635 = vmatprep.subr.bf16.mxu1 %v1925_v43  ;;  %820 = vmatmul.mubr.bf16.vlgmr.msra.gmra.mrb[0].mxu0 %v377_v37 }
  0x2c   : > { %1597 = vmatpush3.bf16.msra.mxu0 %v1801_v42  ;;  %901 = vmatprep.mubr.bf16.mxu0 %v382_v61 }
  0x2d   : > { %861 = vmatmul.mubr.bf16.vlgmr.msra.gmra.mrb[0].mxu1 %v379_v46  ;;  %1598 = vmatprep.subr.bf16.mxu0 %v1802_v47  ;;  %v1822_v47 = vld [vmem:[%s2306_s5 + $0x8] sm:$0xff]  }
  0x2e   : > { %1637 = vmatprep.mubr.msk.bf16.mxu1 %vm1926_vm0, %v1925_v43  ;;  %1636 = vmatpush3.bf16.msra.mxu1 %v1816_v56 }
  0x2f   : > { %1641 = vmatprep.subr.bf16.mxu1 %v1925_v43 }
  0x30   : > { %1599 = vmatpush3.bf16.msra.mxu0 %v1803_v48  ;;  %v1823_v48 = vld [vmem:[%s2306_s5 + $0x10] sm:$0xff]  }
  0x31   : > { %1600 = vmatprep.subr.bf16.mxu0 %v1804_v49  ;;  %v1824_v49 = vld [vmem:[%s2306_s5 + $0x18] sm:$0xff]  }
  0x34   : > { %1601 = vmatpush3.bf16.msra.mxu0 %v1805_v50  ;;  %v1825_v50 = vld [vmem:[%s2308_s7] sm:$0xff]  }
  0x35   : > { %1602 = vmatprep.subr.bf16.mxu0 %v1806_v51  ;;  %1638 = vmatmul.mubr.msk.bf16.vlgmr.msra.gmra.mrb[4].mxu1 %vm783_vm1, %v383_v0  ;;  %v1826_v51 = vld [vmem:[%s2308_s7 + $0x8] sm:$0xff]   ;;  %v1520_v0 = vld [vmem:[%s2307_s6] ss:$0 sm:$0xff] }
  0x36   : > { %1649 = vmatprep.mubr.msk.bf16.mxu1 %vm1926_vm0, %v1925_v43  ;;  %1642 = vmatpush3.bf16.msra.mxu1 %v1817_v7 }
  0x37   : > { %1643 = vmatprep.subr.bf16.mxu1 %v1925_v43 }
  0x38   : > { %1603 = vmatpush3.bf16.msra.mxu0 %v1807_v52  ;;  %v1514_v52 = vld [vmem:[%s2305_s4] ss:$0 sm:$0xff] }
  0x39   : > { %1604 = vmatprep.subr.bf16.mxu0 %v1808_v53 }
  0x3a   : > { %1644 = vmatpush3.bf16.msra.mxu1 %v1818_v8 }
  0x3b   : > { %1645 = vmatprep.subr.bf16.mxu1 %v1925_v43 }
  0x3c   : > { %1605 = vmatpush3.bf16.msra.mxu0 %v1809_v54 }
  0x3d   : > { %1606 = vmatprep.subr.bf16.mxu0 %v1810_v55 }
  0x3e   : > { %1646 = vmatpush3.bf16.msra.mxu1 %v1819_v9 }
  0x3f   : > { %1647 = vmatprep.subr.bf16.mxu1 %v1925_v43 }
  0x40   : > { %1607 = vmatpush3.bf16.msra.mxu0 %v1811_v58 }
  0x41   : > { %1608 = vmatprep.subr.bf16.mxu0 %v1812_v59 }
  0x42   : > { %1648 = vmatpush3.bf16.msra.mxu1 %v1820_v10 }
  0x43   : > { %1653 = vmatprep.subr.bf16.mxu1 %v1925_v43 }
  0x44   : > { %1609 = vmatpush3.bf16.msra.mxu0 %v1813_v1 }
  0x45   : > { %1610 = vmatprep.subr.bf16.mxu0 %v1814_v2 }
  0x48   : > { %1611 = vmatpush3.bf16.msra.mxu0 %v1815_v3 }
  0x49   : > { %1665 = vmatprep.subr.bf16.mxu0 %v1925_v43 }
  0x4b   : > { %902 = vmatmul.mubr.bf16.vlgmr.msra.gmra.mrb[4].mxu0 %v381_v6 }
  0x4c   : > { %1673 = vmatprep.mubr.msk.bf16.mxu0 %vm1926_vm0, %v1925_v43  ;;  %1666 = vmatpush3.bf16.msra.mxu0 %v1825_v50 }
  0x4d   : > { %1667 = vmatprep.subr.bf16.mxu0 %v1925_v43 }
  0x50   : > { %1668 = vmatpush3.bf16.msra.mxu0 %v1826_v51 }
  0x51   : > { %1669 = vmatprep.subr.bf16.mxu0 %v1925_v43 }
  0x54   : > { %1670 = vmatpush3.bf16.msra.mxu0 %v1827_v62 }
  0x55   : > { %1671 = vmatprep.subr.bf16.mxu0 %v1925_v43 }
  0x58   : > { %1672 = vmatpush3.bf16.msra.mxu0 %v1828_v63 }
  0xfe   : > { %v1568_v11 = vpop.f32.mrb[0].mxu0 }
  0xff   : > { %v1569_v13 = vpop.f32.mrb[1].mxu0 }
 0x100   : > { %v1570_v14 = vadd.f32 %v1569_v13, %v1568_v11  ;;  %v1571_v15 = vpop.f32.mrb[2].mxu0  ;;  %v1590_v16 = vpop.f32.mrb[0].mxu1 }
 0x101   : > { %v1572_v17 = vpop.f32.mrb[3].mxu0  ;;  %v1591_v20 = vpop.f32.mrb[1].mxu1 }
 0x102   : > { %v822_v18 = vadd.f32 %v1570_v14, %v1463_v12  ;;  %v1573_v19 = vadd.f32 %v1572_v17, %v1571_v15  ;;  %v1592_v21 = vadd.f32 %v1591_v20, %v1590_v16  ;;  %v1593_v22 = vpop.f32.mrb[2].mxu1 }
 0x103   : > { %v1594_v24 = vpop.f32.mrb[3].mxu1 }
 0x104   : > { %v825_v23 = vadd.f32 %v1573_v19, %v1463_v12  ;;  %v863_v25 = vadd.f32 %v1592_v21, %v822_v18  ;;  %v1595_v26 = vadd.f32 %v1594_v24, %v1593_v22 }
 0x106   : > { %v866_v27 = vadd.f32 %v1595_v26, %v825_v23 }
 0x108   : > { %v944_v28 = vpop.f32.mrb[4].mxu1 }
 0x109   : > { %v1639_v29 = vpop.f32.mrb[5].mxu1 }
 0x10a   : > { %v947_v30 = vpop.f32.mrb[6].mxu1 }
 0x10b   : > { %v1640_v31 = vpop.f32.mrb[7].mxu1 }
 0x11e   : > { %v1612_v32 = vpop.f32.mrb[4].mxu0 }
 0x11f   : > { %v1613_v33 = vpop.f32.mrb[5].mxu0 }
 0x120   : > { %v1614_v34 = vadd.f32 %v1613_v33, %v1612_v32  ;;  %v1615_v35 = vpop.f32.mrb[6].mxu0 }
 0x121   : > { %v1616_v36 = vpop.f32.mrb[7].mxu0 }
 0x122   : > { %v904_v37 = vadd.f32 %v1614_v34, %v863_v25  ;;  %v1617_v38 = vadd.f32 %v1616_v36, %v1615_v35 }
 0x124   : > { %v945_v39 = vadd.f32 %v944_v28, %v904_v37  ;;  %v907_v40 = vadd.f32 %v1617_v38, %v866_v27 }
 0x126   : > { %v948_v41 = vadd.f32 %v947_v30, %v907_v40  ;;  %v951_v42 = vmax.f32 %v945_v39, 0.0 }
 0x128   : > { %v952_v44 = vmax.f32 %v948_v41, 0.0 }
 0x12a   : > { %v953_v46 = vpack.c.bf16 %v952_v44, %v951_v42 }
 0x12c   : > { %1650 = vmatmul.mubr.msk.bf16.vlgmr.msra.gmra.mrb[8].mxu1 %vm993_vm2, %v953_v46 }
 0x12d   : > { %1654 = vmatpush3.bf16.msra.mxu1 %v1821_v45  ;;  %1661 = vmatprep.mubr.msk.bf16.mxu1 %vm1926_vm0, %v1925_v43 }
 0x12e   : > { %1655 = vmatprep.subr.bf16.mxu1 %v1925_v43 }
 0x131   : > { %1656 = vmatpush3.bf16.msra.mxu1 %v1822_v47 }
 0x132   : > { %1657 = vmatprep.subr.bf16.mxu1 %v1925_v43 }
 0x135   : > { %1658 = vmatpush3.bf16.msra.mxu1 %v1823_v48 }
 0x136   : > { %1659 = vmatprep.subr.bf16.mxu1 %v1925_v43  ;;  %v1526_v43 = vld [vmem:[%s2309_s8] ss:$0 sm:$0xff] }
 0x139   : > { %1660 = vmatpush3.bf16.msra.mxu1 %v1824_v49 }
 0x1ff   : > { %v1031_v53 = vpop.f32.mrb[8].mxu1 }
 0x200   : > { %v1032_v54 = vadd.f32 %v1514_v52, %v1031_v53  ;;  %v1651_v55 = vpop.f32.mrb[9].mxu1 }
 0x201   : > { %v1034_v56 = vpop.f32.mrb[10].mxu1 }
 0x202   : > { %v1035_v57 = vadd.f32 %v1514_v52, %v1034_v56  ;;  %v1652_v58 = vpop.f32.mrb[11].mxu1  ;;  %v1038_v59 = vmax.f32 %v1032_v54, 0.0 }
 0x204   : > { %v1039_v60 = vmax.f32 %v1035_v57, 0.0 }
 0x206   : > { %v1040_v61 = vpack.c.bf16 %v1039_v60, %v1038_v59 }
 0x208   : > { %1662 = vmatmul.mubr.msk.bf16.vlgmr.msra.gmra.mrb[12].mxu1 %vm993_vm2, %v1040_v61 }
 0x2db   : > { %v1117_v1 = vpop.f32.mrb[12].mxu1 }
 0x2dc   : > { %v1118_v2 = vadd.f32 %v1520_v0, %v1117_v1  ;;  %v1663_v3 = vpop.f32.mrb[13].mxu1 }
 0x2dd   : > { %v1120_v4 = vpop.f32.mrb[14].mxu1 }
 0x2de   : > { %v1121_v5 = vadd.f32 %v1520_v0, %v1120_v4  ;;  %v1664_v6 = vpop.f32.mrb[15].mxu1  ;;  %v1124_v7 = vmax.f32 %v1118_v2, 0.0 }
 0x2e0   : > { %v1125_v8 = vmax.f32 %v1121_v5, 0.0 }
 0x2e2   : > { %v1126_v9 = vpack.c.bf16 %v1125_v8, %v1124_v7 }
 0x2e4   : > { %1674 = vmatmul.mubr.msk.bf16.vlgmr.msra.gmra.mrb[8].mxu0 %vm993_vm2, %v1126_v9 }
 0x3b7   : > { %v1203_v10 = vpop.f32.mrb[8].mxu0 }
 0x3b8   : > { %v1204_v11 = vadd.f32 %v1526_v43, %v1203_v10  ;;  %v1675_v12 = vpop.f32.mrb[9].mxu0 }
 0x3b9   : > { %v1206_v13 = vpop.f32.mrb[10].mxu0 }
 0x3ba   : > { %v1207_v14 = vadd.f32 %v1526_v43, %v1206_v13  ;;  %v1676_v15 = vpop.f32.mrb[11].mxu0  ;;  %v1211_v16 = vsel %vm1210_vm3, %v1204_v11, -inf }
 0x3bb   : > { %1212 = vmax.xlane.f32.xlu0 %v1211_v16 }
 0x3bc   : > { %v1214_v17 = vsel %vm1210_vm3, %v1207_v14, -inf }
 0x3bf   : > { %1215 = vmax.xlane.f32.xlu0 %v1214_v17 }
 0x448   : > { %v1213_v18 = vpop.xlane.xlu0 %1212 }
 0x449   : > { %v1217_v19 = vsub.f32 %v1204_v11, %v1213_v18 }
 0x44b   : > { %v1219_v20 = vmul.f32 1.442695, %v1217_v19 }
 0x44c   : > { %v1216_v21 = vpop.xlane.xlu0 %1215 }
 0x44d   : > { %1829 = vpow2.f32 %v1219_v20  ;;  %v1218_v22 = vsub.f32 %v1207_v14, %v1216_v21 }
 0x44f   : > { %v1221_v23 = vmul.f32 1.442695, %v1218_v22 }
 0x451   : > { %1831 = vpow2.f32 %v1221_v23 }
 0x457   : > { %v1830_v24 = vpop.eup %1829 }
 0x458   : > { %v1223_v25 = vsel %vm1210_vm3, %v1830_v24, 0.0 }
 0x459   : > { %1224 = vadd.xlane.f32.xlu1 %v1223_v25 }
 0x45b   : > { %v1832_v26 = vpop.eup %1831 }
 0x45c   : > { %v1226_v27 = vsel %vm1210_vm3, %v1832_v26, 0.0 }
 0x45d   : > { %1227 = vadd.xlane.f32.xlu1 %v1226_v27 }
 0x4e6   : > { %v1225_v28 = vpop.xlane.xlu1 %1224 }
 0x4e7   : > { %1833 = vlog2.f32 %v1225_v28 }
 0x4ea   : > { %v1228_v29 = vpop.xlane.xlu1 %1227 }
 0x4eb   : > { %1835 = vlog2.f32 %v1228_v29 }
 0x4f1   : > { %v1834_v30 = vpop.eup %1833 }
 0x4f2   : > { %v1230_v31 = vmul.f32 0.6931472, %v1834_v30 }
 0x4f4   : > { %v1233_v32 = vsub.f32 %v1217_v19, %v1230_v31  ;;  %1243 = sbr.rel (!%p2002_p4) target bundleno = 1324 (0x52c), region = 60 }
 0x4f5   : > { %v1836_v33 = vpop.eup %1835 }
 0x4f6   : > { %1235 = vst.msk [vmem:[%s2254_s11] sm:$0xff] %vm1210_vm3, %v1233_v32  ;;  %v1232_v34 = vmul.f32 0.6931472, %v1836_v33 }
 0x4f8   : > { %v1234_v35 = vsub.f32 %v1218_v22, %v1232_v34 }
 0x4fa   : > { %1236 = vst.msk [vmem:[%s2254_s11 + $0x8] sm:$0xff] %vm1210_vm3, %v1234_v35 }
 0x4fb   : > { %s2316_s30 = smov (!%p1246_p8, %s1245_s30), 2 }
 0x4fc   : > { %s1534_s15 = sshll.u32 %s2316_s30, 7 }
 0x4fd   : > { %p1537_p9 = scmp.eq.s32.totalorder %s1534_s15, 0 }
 0x4fe   : > { %s2273_s22 = sshrl.u32 (!%p1537_p9), %s2316_s30, 1 }
 0x4ff   : > { %1254 = sbr.rel (%p1537_p9) target bundleno = 1324 (0x52c), region = 64  ;;  %p1538_p10 = scmp.le.s32.totalorder (!%p1537_p9), %s2273_s22, 0 }
 0x506   : > { %1412 = sbr.rel (%p1538_p10) target bundleno = 1303 (0x517), region = 140  ;;  %s1893_s12 = smov (!%p1538_p10), %s2267_s21  }
 0x507   : > { %s1897_s17 = smov (!%p1538_p10), %s2254_s11   ;;  %s1901_s14 = smov (!%p1538_p10), 0  }
 0x508   : > { %s1905_s24 = smov (!%p1538_p10), 0  }
 0x50d LB: >> { %v1318_v36 = vld [vmem:[%s1899_s17] sm:$0xff]  ;;  %v1320_v37 = vld [vmem:[%s1899_s17 + $0x8] sm:$0xff]  ;;  %s1322_s25 = sadd.s32 1, %s1903_s14  ;;  %s1312_s24 = sadd.s32 1, %s1907_s24   ;;  %s1907_s24 = sphi %s1905_s24, %s1312_s24   ;;  %s1903_s14 = sphi %s1901_s14, %s1902_s14   ;;  %s1899_s17 = sphi %s1897_s17, %s1327_s17   ;;  %s1895_s12 = sphi %s1893_s12, %s1328_s12  }
 0x50e   : >> { %1319 = vst [vmem:[%s1895_s12] sm:$0xff] %v1318_v36  ;;  %1321 = vst [vmem:[%s1895_s12 + $0x8] sm:$0xff] %v1320_v37  ;;  %p1323_p11 = scmp.ge.s32.totalorder %s1322_s25, %s2273_s22  ;;  %p1311_p12 = scmp.ge.s32.totalorder %s1312_s24, %s2273_s22 }
 0x510   : >> { %s2318_s25 = smov (%p1323_p11, %s1322_s25), 0  ;;  %1314 = sbr.rel (!%p1311_p12) target bundleno = 1293 (0x50d), region = 146 }
 0x511   : >> { %s1539_s27 = sshll.u32 %s2318_s25, 4  ;;  %s1902_s14 = smov %s2318_s25  }
 0x512   : >> { %s1327_s17 = scalar_lea.vmem %s2254_s11, %s1539_s27 [#allocation2]   ;;  %s1328_s12 = scalar_lea.vmem %s2267_s21, %s1539_s27  }
 0x517 PF: > { %s2283_s28 = sand.u32 1, %s2316_s30   ;;  %s1550_s26 = sshll.u32 %s2273_s22, 4 }
 0x518   : > { %s1333_s23 = scalar_lea.vmem %s2254_s11, %s1550_s26 [#allocation2]   ;;  %s1335_s29 = scalar_lea.vmem %s2267_s21, %s1550_s26  }
 0x519   : > { %p1544_p13 = scmp.le.s32.totalorder %s2283_s28, 0 }
 0x51a   : > { %s1909_s18 = smov (!%p1544_p13), %s1335_s29   ;;  %s1913_s19 = smov (!%p1544_p13), %s1333_s23  }
 0x51b   : > { %1426 = sbr.rel (%p1544_p13) target bundleno = 1324 (0x52c), region = 151  ;;  %s1917_s20 = smov (!%p1544_p13), 0  }
 0x51c   : > { %s1921_s15 = smov (!%p1544_p13), 0  }
 0x522 LB: >> { %v1345_v38 = vld [vmem:[%s1915_s19] sm:$0xff]  ;;  %s1347_s30 = sadd.s32 1, %s1919_s20  ;;  %s1339_s15 = sadd.s32 1, %s1923_s15   ;;  %s1923_s15 = sphi %s1921_s15, %s1339_s15   ;;  %s1919_s20 = sphi %s1917_s20, %s1918_s20   ;;  %s1915_s19 = sphi %s1913_s19, %s1352_s19   ;;  %s1911_s18 = sphi %s1909_s18, %s1353_s18  }
 0x523   : >> { %1346 = vst [vmem:[%s1911_s18] sm:$0xff] %v1345_v38  ;;  %p1348_p0 = scmp.ge.s32.totalorder %s1347_s30, %s2283_s28  ;;  %p1338_p1 = scmp.ge.s32.totalorder %s1339_s15, %s2283_s28 }
 0x525   : >> { %s2320_s30 = smov (%p1348_p0, %s1347_s30), 0  ;;  %1341 = sbr.rel (!%p1338_p1) target bundleno = 1314 (0x522), region = 157 }
 0x526   : >> { %s1545_s11 = sshll.u32 %s2320_s30, 3  ;;  %s1918_s20 = smov %s2320_s30  }
 0x527   : >> { %s1352_s19 = scalar_lea.vmem %s1333_s23, %s1545_s11 [#allocation2]   ;;  %s1353_s18 = scalar_lea.vmem %s1335_s29, %s1545_s11  }
 0x52c PF: > { %p16_p2 = scmp.ge.s32.totalorder %s1992_s13, 4   ;;  %s2312_s30 = smov %s1887_s10 }
 0x52d   : > { %s2313_s10 = smov %s2000_s16  ;;  %s2314_s11 = smov %s1992_s13 }
 0x52e   :  { %18 = sbr.rel (!%p16_p2) target bundleno = 2 (0x2), region = 168 }

</bundles_post_ra>
